<compile_context>
chip_gen: v6e
topology: v6e:2x2x1
jax: 0.10.0
libtpu: 0.0.40
codegen_flags: <defaults>
</compile_context>

<pallas_src>
import itertools

import numpy as np
import jax
import jax.numpy as jnp
from jax.experimental import pallas as pl
from jax.experimental.pallas import tpu as pltpu


def _round_up(x, m):
    return ((x + m - 1) // m) * m


# --------------------------------------------------------------------------
# Pallas kernel: pairwise L-infinity distances between the two diagrams.
# --------------------------------------------------------------------------
def _linf_kernel(b0_ref, d0_ref, b1_ref, d1_ref, out_ref):
    b0 = b0_ref[...]          # (tm, 1)  births of dgm0 tile
    d0 = d0_ref[...]          # (tm, 1)  deaths of dgm0 tile
    b1 = b1_ref[...]          # (1, tn)  births of dgm1 tile
    d1 = d1_ref[...]          # (1, tn)  deaths of dgm1 tile
    out_ref[...] = jnp.maximum(jnp.abs(b0 - b1), jnp.abs(d0 - d1))


def _pairwise_linf(dgm0, dgm1):
    """Device hot path: (P0, P1) L_inf cost block, tiled over a 2-D grid."""
    dgm0 = jnp.asarray(dgm0, jnp.float32)
    dgm1 = jnp.asarray(dgm1, jnp.float32)
    n0 = max(int(dgm0.shape[0]), 1)
    n1 = max(int(dgm1.shape[0]), 1)

    # sublane-axis tile (rows of dgm0) and lane-axis tile (cols / dgm1)
    tm = 256 if n0 > 256 else _round_up(n0, 8)
    tn = 512 if n1 > 512 else _round_up(n1, 128)
    P0 = _round_up(n0, tm)
    P1 = _round_up(n1, tn)

    b0 = jnp.zeros((P0, 1), jnp.float32).at[:dgm0.shape[0], 0].set(dgm0[:, 0])
    d0 = jnp.zeros((P0, 1), jnp.float32).at[:dgm0.shape[0], 0].set(dgm0[:, 1])
    b1 = jnp.zeros((1, P1), jnp.float32).at[0, :dgm1.shape[0]].set(dgm1[:, 0])
    d1 = jnp.zeros((1, P1), jnp.float32).at[0, :dgm1.shape[0]].set(dgm1[:, 1])

    grid = (P0 // tm, P1 // tn)
    cost = pl.pallas_call(
        _linf_kernel,
        out_shape=jax.ShapeDtypeStruct((P0, P1), jnp.float32),
        grid=grid,
        in_specs=[
            pl.BlockSpec((tm, 1), lambda i, j: (i, 0)),
            pl.BlockSpec((tm, 1), lambda i, j: (i, 0)),
            pl.BlockSpec((1, tn), lambda i, j: (0, j)),
            pl.BlockSpec((1, tn), lambda i, j: (0, j)),
        ],
        out_specs=pl.BlockSpec((tm, tn), lambda i, j: (i, j)),
        compiler_params=pltpu.CompilerParams(
            dimension_semantics=("parallel", "parallel"),
            vmem_limit_bytes=32 * 1024 * 1024,
        ),
        cost_estimate=pl.CostEstimate(
            flops=5 * P0 * P1,
            transcendentals=0,
            bytes_accessed=4 * (P0 * P1 + 2 * P0 + 2 * P1),
        ),
    )(b0, d0, b1, d1)
    return cost, P0, P1


# --------------------------------------------------------------------------
# Host-side exact bottleneck solver (threshold search + bipartite matching).
# --------------------------------------------------------------------------
def _has_perfect_matching(adj):
    """Kuhn's augmenting-path maximum bipartite matching (host, small S)."""
    S = adj.shape[0]
    match_r = [-1] * S

    def try_kuhn(u, seen):
        for v in range(S):
            if adj[u, v] and not seen[v]:
                seen[v] = True
                if match_r[v] == -1 or try_kuhn(match_r[v], seen):
                    match_r[v] = u
                    return True
        return False

    matched = 0
    for u in range(S):
        if try_kuhn(u, [False] * S):
            matched += 1
    return matched == S


def _bottleneck_value(M):
    """Exact bottleneck assignment: binary search over thresholds + matching."""
    S = M.shape[0]
    if S == 0:
        return 0.0
    cands = np.unique(M)
    lo, hi = 0, len(cands) - 1
    while lo < hi:
        mid = (lo + hi) // 2
        if _has_perfect_matching(M <= cands[mid]):
            hi = mid
        else:
            lo = mid + 1
    return float(cands[lo])


def bottleneck_layer(dgm0, dgm1):
    """Forward of torch_tda.BottleneckLayer: scalar bottleneck distance."""
    d0n = np.asarray(jax.device_get(jnp.asarray(dgm0, jnp.float32)), np.float64)
    d1n = np.asarray(jax.device_get(jnp.asarray(dgm1, jnp.float32)), np.float64)

    # remove_zero_bars: drop bars with birth == death
    maskA = d0n[:, 0] != d0n[:, 1]
    maskB = d1n[:, 0] != d1n[:, 1]
    idxA = np.where(maskA)[0]
    idxB = np.where(maskB)[0]
    nA, nB = len(idxA), len(idxB)
    S = nA + nB
    if S == 0:
        return jnp.asarray(0.0, jnp.float32)

    # O(N^2) pairwise L_inf block on TPU; only the [:n0, :n1] slab crosses PCIe.
    if nA and nB:
        cost, _, _ = _pairwise_linf(dgm0, dgm1)
        C = np.asarray(
            jax.device_get(cost[: d0n.shape[0], : d1n.shape[0]]), np.float64
        )
        linf_block = C[np.ix_(idxA, idxB)]
    else:
        linf_block = np.zeros((nA, nB), np.float64)

    # O(N) diagonal distances computed on host from the raw diagrams.
    diag0 = 0.5 * (d0n[idxA, 1] - d0n[idxA, 0])
    diag1 = 0.5 * (d1n[idxB, 1] - d1n[idxB, 0])

    # Augmented square cost matrix for the bottleneck assignment problem.
    M = np.zeros((S, S), np.float64)
    M[:nA, :nB] = linf_block
    if nA:
        M[:nA, nB:] = diag0[:, None]
    if nB:
        M[nA:, :nB] = diag1[None, :]
    # bottom-right (diagonal <-> diagonal) quadrant stays 0

    # TODO(synk): the exact bottleneck solver (threshold search + bipartite
    # matching, done by persim/BATS inside torch_tda) is inherently
    # sequential/combinatorial and runs on host; only the O(N^2) cost-matrix
    # construction is a Pallas kernel.
    d = _bottleneck_value(M)
    return jnp.asarray(d, dtype=jnp.float32)


# --------------------------------------------------------------------------
# Reference (tiny cases only): brute force over all matchings.
# --------------------------------------------------------------------------
def _brute_force_bottleneck(A, B):
    A = A[A[:, 0] != A[:, 1]]
    B = B[B[:, 0] != B[:, 1]]
    nA, nB = len(A), len(B)
    S = nA + nB
    if S == 0:
        return 0.0
    M = np.zeros((S, S))
    for i in range(nA):
        for j in range(nB):
            M[i, j] = max(abs(A[i, 0] - B[j, 0]), abs(A[i, 1] - B[j, 1]))
        M[i, nB:] = (A[i, 1] - A[i, 0]) / 2.0
    for j in range(nB):
        M[nA:, j] = (B[j, 1] - B[j, 0]) / 2.0
    best = np.inf
    for perm in itertools.permutations(range(S)):
        best = min(best, max(M[i, perm[i]] for i in range(S)))
    return best


if __name__ == "__main__":
    key = jax.random.PRNGKey(0)
    k0, k1, k2, k3 = jax.random.split(key, 4)
    n0, n1 = 8, 6
    b0 = jax.random.uniform(k0, (n0,), dtype=jnp.float32)
    p0 = jax.random.uniform(k1, (n0,), dtype=jnp.float32) * 0.5
    dgm0 = jnp.stack([b0, b0 + p0], axis=1)           # (8, 2)
    b1 = jax.random.uniform(k2, (n1,), dtype=jnp.float32)
    p1 = jax.random.uniform(k3, (n1,), dtype=jnp.float32) * 0.5
    dgm1 = jnp.stack([b1, b1 + p1], axis=1)           # (6, 2)
    # inject zero-length bars (removed by remove_zero_bars)
    dgm0 = dgm0.at[3, 1].set(dgm0[3, 0])
    dgm1 = dgm1.at[0, 1].set(dgm1[0, 0])

    d = bottleneck_layer(dgm0, dgm1)
    d = jax.block_until_ready(d)

    # --- sanity check 1: kernel L_inf block vs numpy pairwise L_inf ---------
    cost, P0, P1 = _pairwise_linf(dgm0, dgm1)
    Cn = np.asarray(jax.block_until_ready(cost))
    d0n, d1n = np.asarray(dgm0), np.asarray(dgm1)
    mA = d0n[:, 0] != d0n[:, 1]
    mB = d1n[:, 0] != d1n[:, 1]
    A, B = d0n[mA], d1n[mB]
    ref = np.maximum(np.abs(A[:, None, 0] - B[None, :, 0]),
                     np.abs(A[:, None, 1] - B[None, :, 1]))
    got = Cn[np.ix_(np.where(mA)[0], np.where(mB)[0])]
    assert np.allclose(got, ref, atol=1e-6), "pairwise L_inf block mismatch"

    # --- sanity check 2: full pipeline vs brute-force matching (tiny case) --
    tinyA = np.array([[0.10, 0.50], [0.30, 0.90], [0.20, 0.20]], np.float32)
    tinyB = np.array([[0.15, 0.55], [0.40, 0.40]], np.float32)
    d_tiny = float(bottleneck_layer(jnp.asarray(tinyA), jnp.asarray(tinyB)))
    d_ref = _brute_force_bottleneck(tinyA.astype(np.float64),
                                    tinyB.astype(np.float64))
    assert abs(d_tiny - d_ref) < 1e-5, "bottleneck value mismatch vs brute force"

    print("KERNEL_OK")
</pallas_src>

<mosaic_0001>
module attributes {stable_mosaic.version = 11 : i64} {
  func.func @_linf_kernel(%arg0: i32, %arg1: i32, %arg2: memref<8x1xf32, #tpu.memory_space<vmem>>, %arg3: memref<8x1xf32, #tpu.memory_space<vmem>>, %arg4: memref<1x128xf32, #tpu.memory_space<vmem>>, %arg5: memref<1x128xf32, #tpu.memory_space<vmem>>, %arg6: memref<8x128xf32, #tpu.memory_space<vmem>>) attributes {dimension_semantics = [#tpu.dimension_semantics<parallel>, #tpu.dimension_semantics<parallel>], iteration_bounds = array<i64: 1, 1>, scalar_prefetch = 0 : i64, scratch_operands = 0 : i64, tpu.core_type = #tpu.core_type<tc>, window_params = [{transform_indices = @transform_0, window_bounds = array<i64: 8, 1>}, {transform_indices = @transform_1, window_bounds = array<i64: 8, 1>}, {transform_indices = @transform_2, window_bounds = array<i64: 1, 128>}, {transform_indices = @transform_3, window_bounds = array<i64: 1, 128>}, {transform_indices = @transform_4, window_bounds = array<i64: 8, 128>}]} {
    %c0 = arith.constant 0 : index
    %c0_0 = arith.constant 0 : index
    %0 = vector.load %arg2[%c0, %c0_0] : memref<8x1xf32, #tpu.memory_space<vmem>>, vector<8x1xf32>
    %c0_1 = arith.constant 0 : index
    %c0_2 = arith.constant 0 : index
    %1 = vector.load %arg3[%c0_1, %c0_2] : memref<8x1xf32, #tpu.memory_space<vmem>>, vector<8x1xf32>
    %c0_3 = arith.constant 0 : index
    %c0_4 = arith.constant 0 : index
    %2 = vector.load %arg4[%c0_3, %c0_4] : memref<1x128xf32, #tpu.memory_space<vmem>>, vector<1x128xf32>
    %c0_5 = arith.constant 0 : index
    %c0_6 = arith.constant 0 : index
    %3 = vector.load %arg5[%c0_5, %c0_6] : memref<1x128xf32, #tpu.memory_space<vmem>>, vector<1x128xf32>
    %4 = vector.broadcast %0 : vector<8x1xf32> to vector<8x128xf32>
    %5 = vector.broadcast %2 : vector<1x128xf32> to vector<8x128xf32>
    %6 = arith.subf %4, %5 : vector<8x128xf32>
    %7 = math.absf %6 : vector<8x128xf32>
    %8 = vector.broadcast %1 : vector<8x1xf32> to vector<8x128xf32>
    %9 = vector.broadcast %3 : vector<1x128xf32> to vector<8x128xf32>
    %10 = arith.subf %8, %9 : vector<8x128xf32>
    %11 = math.absf %10 : vector<8x128xf32>
    %12 = arith.maximumf %7, %11 : vector<8x128xf32>
    %c0_7 = arith.constant 0 : index
    %c0_8 = arith.constant 0 : index
    %13 = vector.load %arg6[%c0_7, %c0_8] : memref<8x128xf32, #tpu.memory_space<vmem>>, vector<8x128xf32>
    tpu.vector_store %arg6[%c0_7, %c0_8], %12 {strides = array<i32>} : memref<8x128xf32, #tpu.memory_space<vmem>>, vector<8x128xf32>,
    return
  }
  func.func @transform_0(%arg0: i32, %arg1: i32) -> (i32, i32) {
    %c0_i32 = arith.constant 0 : i32
    %c0_i32_0 = arith.constant 0 : i32
    return %arg0, %c0_i32 : i32, i32
  }
  func.func @transform_1(%arg0: i32, %arg1: i32) -> (i32, i32) {
    %c0_i32 = arith.constant 0 : i32
    %c0_i32_0 = arith.constant 0 : i32
    return %arg0, %c0_i32 : i32, i32
  }
  func.func @transform_2(%arg0: i32, %arg1: i32) -> (i32, i32) {
    %c0_i32 = arith.constant 0 : i32
    %c0_i32_0 = arith.constant 0 : i32
    return %c0_i32, %arg1 : i32, i32
  }
  func.func @transform_3(%arg0: i32, %arg1: i32) -> (i32, i32) {
    %c0_i32 = arith.constant 0 : i32
    %c0_i32_0 = arith.constant 0 : i32
    return %c0_i32, %arg1 : i32, i32
  }
  func.func @transform_4(%arg0: i32, %arg1: i32) -> (i32, i32) {
    %c0_i32 = arith.constant 0 : i32
    return %arg0, %arg1 : i32, i32
  }
}

</mosaic_0001>

<bundles_post_ra>
// kernel: tpu_custom_call.1
= control target key start
LH: loop header
LB: loop body
LE: loop exit
PB: predicated region body
PF: predicated region fallthrough
CT: control target
= control target key end

     0   :  { %v91_v1 = vmov 0   ;;  %s133_s0 = inlined_call_operand.vmem [shape: f32[8,1], index: 0, kind: input, shape index: {}]   ;;  %s134_s1 = inlined_call_operand.vmem [shape: f32[8,1], index: 1, kind: input, shape index: {}]   ;;  %s135_s2 = inlined_call_operand.vmem [shape: f32[1,128], index: 2, kind: input, shape index: {}]   ;;  %s136_s3 = inlined_call_operand.vmem [shape: f32[1,128], index: 3, kind: input, shape index: {}]   ;;  %s137_s4 = inlined_call_operand.hbm [shape: f32[8,128], index: 4, kind: output, shape index: {}]  }
   0x1   :  { %v18_v0 = vld [vmem:[%s133_s0] sm:$0xff]  ;;  %68 = vset.pattern.permute.xlu0 %v91_v1 }
   0x2   :  { %9 = vsyncpa [#allocation3], 0  ;;  %24 = vperm.xlu0 %68, %v18_v0   ;;  %v19_v2 = vld [vmem:[%s134_s1] sm:$0xff]  ;;  %s92_s0 = smov [#allocation2]  }
   0x3   :  { %v64_v3 = vld [vmem:[%s135_s2] ss:$0 sm:$0xff]  ;;  %s56_s23 = sshll.u32 %s92_s0, 4  ;;  %s57_s23 = int_to_ptr.vmem [resolvable:$true] %s56_s23 }
   0x4   :  { %v65_v5 = vld [vmem:[%s136_s3] ss:$0 sm:$0xff]  ;;  %s69_s1 = scalar_lea.vmem %s57_s23, 128  ;;  %p74_p1 = scmp.lt.s32.totalorder %s57_s23, %s57_s23 }
   0x5   :  { %p70_p0 = scmp.ne.s32.totalorder %s57_s23, %s69_s1  ;;  %p75_p2 = scmp.lt.s32.totalorder %s69_s1, %s69_s1 }
   0x6   :  { %37 = vperm.xlu0 %68, %v19_v2  }
   0x7   :  { %p76_p3 = por %p75_p2, %p74_p1 }
   0x9   :  { %p77_p4 = pnand %p76_p3, %p70_p0 }
  0x7d   :  { %v25_v4 = vpop.permute.xlu0 %24 }
  0x7e   :  { %v33_v6 = vsub.f32 %v25_v4, %v64_v3 }
  0x80   :  { %v34_v9 = vand.u32 2147483647, %v33_v6 }
  0x81   :  { %v38_v7 = vpop.permute.xlu0 %37 }
  0x82   :  { %v46_v8 = vsub.f32 %v38_v7, %v65_v5 }
  0x84   :  { %v47_v10 = vand.u32 2147483647, %v46_v8 }
  0x86   :  { %v48_v11 = vmax.f32.f32 %v34_v9, %v47_v10 }
  0x88   :  { %49 = vst [vmem:[#allocation2] sm:$0xff] %v48_v11 }
  0x89   :  { %80 = shalt.err (!%p77_p4)
}
  0x8a   :  { %59 = dma.vmem_to_hbm [thread:$0]  %s57_s23, 128, %s137_s4, [#allocation3]  }
  0x8b   :  { %89 = dma.done.wait [#allocation3], 128  }
  0x8c   :  { %90 = vsyncadd [#allocation3], 4294967168 }
  0x8d   :  { %63 = vsyncpa [#allocation3], 1 }

</bundles_post_ra>
